<compile_context>
chip_gen: v5e
topology: v5e:2x2
jax: 0.10.0
libtpu: 0.0.40
codegen_flags: <defaults>
</compile_context>

<pallas_src>
import functools

import jax
import jax.numpy as jnp
from jax.experimental import pallas as pl
from jax.experimental.pallas import tpu as pltpu


def _round_up(x, m):
    return ((x + m - 1) // m) * m


def _device_tile_defaults():
    """(row-tile target, vmem_limit_bytes) per TPU generation."""
    kind = ""
    try:
        kind = jax.devices()[0].device_kind.lower()
    except Exception:  # pragma: no cover - defensive
        pass
    if "v7" in kind or "7x" in kind:
        # 64 MiB physical VMEM per TC -> leave headroom for Mosaic scratch.
        return 512, 56 * 1024 * 1024
    if "v6" in kind:
        # 128 MiB physical; spend it on bigger row tiles to pass the HBM roofline.
        return 1024, 100 * 1024 * 1024
    if "v5e" in kind or "v5 lite" in kind or "v5litepod" in kind:
        return 512, 100 * 1024 * 1024
    return 256, None  # unknown generation: conservative tiles, default VMEM limit


def _vmem_bytes(tm, th, c_pad, o_pad, itemsize):
    # Double-buffered pipeline buffers (x, w1, b1, w2, b2, out) + f32 accumulator.
    bufs = 2 * (tm * c_pad + c_pad * th + th + th * o_pad + o_pad + tm * o_pad)
    return bufs * itemsize + tm * o_pad * 4


def _select_tiles(m, c_pad, h, o_pad, itemsize, tm_target, vmem_budget):
    tm = max(128, min(_round_up(tm_target, 128), _round_up(m, 128)))
    h128 = _round_up(h, 128)
    # Largest hidden tile that fits; th == h128 keeps the weights fully resident
    # (constant block index -> weights DMA'd exactly once).
    cands = sorted({h128, 1024, 512, 256, 128}, reverse=True)
    cands = [c for c in cands if c <= h128]
    th = None
    for c in cands:
        if _vmem_bytes(tm, c, c_pad, o_pad, itemsize) <= vmem_budget:
            th = c
            break
    if th is None:
        th = 128
        while tm > 128 and _vmem_bytes(tm, th, c_pad, o_pad, itemsize) > vmem_budget:
            tm -= 128
    return tm, th


def _mlp_kernel(x_ref, w1_ref, b1_ref, w2_ref, b2_ref, o_ref, acc_ref, *, chunk):
    # Grid: (row_tiles, hidden_tiles); hidden axis (innermost) is the reduction.
    # x_ref : (tm, C)    w1_ref: (C, th)   b1_ref: (1, th)
    # w2_ref: (th, O)    b2_ref: (1, O)    o_ref : (tm, O)   acc_ref: (tm, O) f32
    h_idx = pl.program_id(1)

    @pl.when(h_idx == 0)
    def _():
        acc_ref[...] = jnp.zeros_like(acc_ref)

    x = x_ref[...]
    th = w1_ref.shape[1]
    inv_sqrt2 = jnp.float32(0.7071067811865476)

    # Split the hidden tile into static sub-chunks so the erf-GELU / cast of one
    # chunk (VALU/EUP) overlaps the next chunk's MXU matmuls.
    for off in range(0, th, chunk):
        w1c = w1_ref[:, off:off + chunk]
        b1c = b1_ref[:, off:off + chunk]
        # fc1 partial: native-dtype operands straight to the MXU, f32 accumulation.
        hid = jnp.dot(x, w1c, preferred_element_type=jnp.float32)
        hid = hid + b1c.astype(jnp.float32)
        # Exact GELU (erf), matches torch.nn.GELU default; elementwise, so it
        # commutes with tiling/chunking the hidden dimension.
        hid = 0.5 * hid * (1.0 + jax.lax.erf(hid * inv_sqrt2))
        # fc2 partial, accumulated over hidden chunks/tiles (f32 VMEM accumulator).
        acc_ref[...] += jnp.dot(hid.astype(w2_ref.dtype), w2_ref[off:off + chunk, :],
                                preferred_element_type=jnp.float32)

    @pl.when(h_idx == pl.num_programs(1) - 1)
    def _():
        o_ref[...] = (acc_ref[...] + b2_ref[...].astype(jnp.float32)
                      ).astype(o_ref.dtype)


@functools.partial(jax.jit,
                   static_argnames=("tm", "th", "vmem_limit", "out_dtype"))
def _mlp_pallas_impl(x2d, w1, b1, w2, b2, *, tm, th, vmem_limit, out_dtype):
    M, C = x2d.shape
    H = w1.shape[1]
    O = w2.shape[1]

    # Lane-dense / MXU-friendly padded sizes (all multiples of 128).
    C_pad = _round_up(C, 128)
    O_pad = _round_up(O, 128)
    M_pad = _round_up(M, tm)
    H_pad = _round_up(H, th)

    # Zero padding is exact: padded x cols / w1 rows contribute 0 to fc1, padded b1
    # entries are 0 so GELU(0)=0, and padded w2 rows contribute 0 to fc2.  Padded
    # output rows/cols are sliced off by the caller.  (Pads are no-ops for aligned
    # shapes; for production, pre-pad the weights once outside the call.)
    xp = jnp.pad(x2d, ((0, M_pad - M), (0, C_pad - C)))
    w1p = jnp.pad(w1, ((0, C_pad - C), (0, H_pad - H)))
    b1p = jnp.pad(b1, (0, H_pad - H)).reshape(1, H_pad)
    w2p = jnp.pad(w2, ((0, H_pad - H), (0, O_pad - O)))
    b2p = jnp.pad(b2, (0, O_pad - O)).reshape(1, O_pad)

    grid = (M_pad // tm, H_pad // th)
    chunk = 256 if th % 256 == 0 else 128

    itemsize = jnp.dtype(x2d.dtype).itemsize
    cost = pl.CostEstimate(
        flops=2 * M_pad * (C_pad * H_pad + H_pad * O_pad),
        transcendentals=M_pad * H_pad,
        bytes_accessed=(M_pad * C_pad + C_pad * H_pad + H_pad
                        + H_pad * O_pad + O_pad + M_pad * O_pad) * itemsize,
    )

    cp_kwargs = dict(dimension_semantics=("parallel", "arbitrary"))
    if vmem_limit is not None:
        cp_kwargs["vmem_limit_bytes"] = int(vmem_limit)

    out2d = pl.pallas_call(
        functools.partial(_mlp_kernel, chunk=chunk),
        out_shape=jax.ShapeDtypeStruct((M_pad, O_pad), out_dtype),
        grid_spec=pltpu.PrefetchScalarGridSpec(
            num_scalar_prefetch=0,
            grid=grid,
            in_specs=[
                pl.BlockSpec((tm, C_pad), lambda i, h: (i, 0)),    # x row tile
                pl.BlockSpec((C_pad, th), lambda i, h: (0, h)),    # w1 hidden tile
                pl.BlockSpec((1, th), lambda i, h: (0, h)),        # b1 hidden tile
                pl.BlockSpec((th, O_pad), lambda i, h: (h, 0)),    # w2 hidden tile
                pl.BlockSpec((1, O_pad), lambda i, h: (0, 0)),     # b2 (resident)
            ],
            out_specs=pl.BlockSpec((tm, O_pad), lambda i, h: (i, 0)),
            scratch_shapes=[pltpu.VMEM((tm, O_pad), jnp.float32)],  # fc2 accumulator
        ),
        compiler_params=pltpu.CompilerParams(**cp_kwargs),
        cost_estimate=cost,
    )(xp, w1p, b1p, w2p, b2p)

    return out2d[:M, :O]


def mlp_pallas(x, w1, b1, w2, b2, *, tm=None, th=None, compute_dtype=None):
    """x: (B, N, C); w1: (C, H); b1: (H,); w2: (H, O); b2: (O,).

    Weights are stored pre-transposed ((in, hidden)/(hidden, out)) so the kernel does
    plain row-major x @ W matmuls on the MXU.  Pass compute_dtype=jnp.bfloat16 to feed
    bf16 operands to the MXU (f32 accumulation is kept); default preserves f32 exactly.
    """
    B, N, C = x.shape
    M = B * N
    H = w1.shape[1]
    O = w2.shape[1]
    out_dtype = jnp.dtype(x.dtype)

    if compute_dtype is not None:
        x = x.astype(compute_dtype)
        w1 = w1.astype(compute_dtype)
        w2 = w2.astype(compute_dtype)

    itemsize = jnp.dtype(x.dtype).itemsize
    tm_target, vmem_limit = _device_tile_defaults()
    if tm is not None:
        tm_target = tm
    budget = int(0.75 * (vmem_limit if vmem_limit is not None else 32 * 1024 * 1024))
    tm_sel, th_sel = _select_tiles(M, _round_up(C, 128), H, _round_up(O, 128),
                                   itemsize, tm_target, budget)
    if th is not None:
        th_sel = _round_up(th, 128)

    out2d = _mlp_pallas_impl(x.reshape(M, C), w1, b1, w2, b2,
                             tm=tm_sel, th=th_sel, vmem_limit=vmem_limit,
                             out_dtype=out_dtype)
    return out2d.reshape(B, N, O)


def mlp_reference(x, w1, b1, w2, b2):
    h = jnp.einsum("bnc,ch->bnh", x, w1, precision="highest") + b1
    h = jax.nn.gelu(h, approximate=False)
    return jnp.einsum("bnh,ho->bno", h, w2, precision="highest") + b2


if __name__ == "__main__":
    # Small shapes consistent with the module: tokens (B, N, C)
    B, N = 2, 8
    in_features, hidden_features, out_features = 32, 64, 32

    key = jax.random.PRNGKey(0)
    kx, k1, k2, k3, k4 = jax.random.split(key, 5)

    x = jax.random.normal(kx, (B, N, in_features), dtype=jnp.float32)

    # Deterministic parameter init (shapes from nn.Linear); stored pre-transposed
    # as (in, hidden) / (hidden, out) so the kernel can do x @ W directly.
    w1 = jax.random.normal(k1, (in_features, hidden_features), jnp.float32) * 0.05
    b1 = jax.random.normal(k2, (hidden_features,), jnp.float32) * 0.05
    w2 = jax.random.normal(k3, (hidden_features, out_features), jnp.float32) * 0.05
    b2 = jax.random.normal(k4, (out_features,), jnp.float32) * 0.05

    out = mlp_pallas(x, w1, b1, w2, b2)
    out = jax.block_until_ready(out)

    ref = mlp_reference(x, w1, b1, w2, b2)
    assert out.shape == (B, N, out_features)
    assert jnp.allclose(out, ref, atol=2e-4, rtol=2e-4), "mismatch vs reference"

    print("KERNEL_OK")
</pallas_src>

<mosaic_0001>
module attributes {stable_mosaic.version = 11 : i64} {
  func.func @_mlp_kernel(%arg0: i32, %arg1: i32, %arg2: memref<128x128xf32, #tpu.memory_space<vmem>>, %arg3: memref<128x128xf32, #tpu.memory_space<vmem>>, %arg4: memref<1x128xf32, #tpu.memory_space<vmem>>, %arg5: memref<128x128xf32, #tpu.memory_space<vmem>>, %arg6: memref<1x128xf32, #tpu.memory_space<vmem>>, %arg7: memref<128x128xf32, #tpu.memory_space<vmem>>, %arg8: memref<128x128xf32, #tpu.memory_space<vmem>>) attributes {dimension_semantics = [#tpu.dimension_semantics<parallel>, #tpu.dimension_semantics<arbitrary>], iteration_bounds = array<i64: 1, 1>, scalar_prefetch = 0 : i64, scratch_operands = 1 : i64, tpu.core_type = #tpu.core_type<tc>, window_params = [{transform_indices = @transform_0, window_bounds = array<i64: 128, 128>}, {transform_indices = @transform_1, window_bounds = array<i64: 128, 128>}, {transform_indices = @transform_2, window_bounds = array<i64: 1, 128>}, {transform_indices = @transform_3, window_bounds = array<i64: 128, 128>}, {pipeline_mode = #tpu.pipeline_mode<synchronous>, transform_indices = @transform_4, window_bounds = array<i64: 1, 128>}, {transform_indices = @transform_5, window_bounds = array<i64: 128, 128>}]} {
    %c0_i32 = arith.constant 0 : i32
    %0 = arith.cmpi eq, %arg1, %c0_i32 : i32
    %1 = arith.extui %0 : i1 to i32
    %c0_i32_0 = arith.constant 0 : i32
    %2 = arith.cmpi ne, %1, %c0_i32_0 : i32
    scf.if %2 {
      %cst_18 = arith.constant 0.000000e+00 : f32
      %25 = vector.broadcast %cst_18 : f32 to vector<128x128xf32>
      %c0_19 = arith.constant 0 : index
      %c0_20 = arith.constant 0 : index
      %26 = vector.load %arg8[%c0_19, %c0_20] : memref<128x128xf32, #tpu.memory_space<vmem>>, vector<128x128xf32>
      tpu.vector_store %arg8[%c0_19, %c0_20], %25 {strides = array<i32>} : memref<128x128xf32, #tpu.memory_space<vmem>>, vector<128x128xf32>,
    } else {
    }
    %c0 = arith.constant 0 : index
    %c0_1 = arith.constant 0 : index
    %3 = vector.load %arg2[%c0, %c0_1] : memref<128x128xf32, #tpu.memory_space<vmem>>, vector<128x128xf32>
    %c0_2 = arith.constant 0 : index
    %c0_3 = arith.constant 0 : index
    %4 = vector.load %arg3[%c0_2, %c0_3] : memref<128x128xf32, #tpu.memory_space<vmem>>, vector<128x128xf32>
    %c0_4 = arith.constant 0 : index
    %c0_5 = arith.constant 0 : index
    %5 = vector.load %arg4[%c0_4, %c0_5] : memref<1x128xf32, #tpu.memory_space<vmem>>, vector<1x128xf32>
    %cst = arith.constant dense<0.000000e+00> : vector<128x128xf32>
    %6 = tpu.matmul %3, %4, %cst {dimension_numbers = #tpu.dot_dimension_numbers<[1], [0], [0], [1], [0, 0, 1, 1], [], []>} : vector<128x128xf32>, vector<128x128xf32>, vector<128x128xf32> -> vector<128x128xf32>
    %7 = vector.broadcast %5 : vector<1x128xf32> to vector<128x128xf32>
    %8 = arith.addf %6, %7 : vector<128x128xf32>
    %cst_6 = arith.constant 5.000000e-01 : f32
    %9 = vector.broadcast %cst_6 : f32 to vector<128x128xf32>
    %10 = arith.mulf %9, %8 : vector<128x128xf32>
    %cst_7 = arith.constant 0.707106769 : f32
    %11 = vector.broadcast %cst_7 : f32 to vector<128x128xf32>
    %12 = arith.mulf %8, %11 : vector<128x128xf32>
    %13 = math.erf %12 : vector<128x128xf32>
    %cst_8 = arith.constant 1.000000e+00 : f32
    %14 = vector.broadcast %cst_8 : f32 to vector<128x128xf32>
    %15 = arith.addf %14, %13 : vector<128x128xf32>
    %16 = arith.mulf %10, %15 : vector<128x128xf32>
    %c0_9 = arith.constant 0 : index
    %c0_10 = arith.constant 0 : index
    %17 = vector.load %arg8[%c0_9, %c0_10] : memref<128x128xf32, #tpu.memory_space<vmem>>, vector<128x128xf32>
    %c0_11 = arith.constant 0 : index
    %c0_12 = arith.constant 0 : index
    %18 = vector.load %arg5[%c0_11, %c0_12] : memref<128x128xf32, #tpu.memory_space<vmem>>, vector<128x128xf32>
    %cst_13 = arith.constant dense<0.000000e+00> : vector<128x128xf32>
    %19 = tpu.matmul %16, %18, %cst_13 {dimension_numbers = #tpu.dot_dimension_numbers<[1], [0], [0], [1], [0, 0, 1, 1], [], []>} : vector<128x128xf32>, vector<128x128xf32>, vector<128x128xf32> -> vector<128x128xf32>
    %20 = arith.addf %17, %19 : vector<128x128xf32>
    %c0_14 = arith.constant 0 : index
    %c0_15 = arith.constant 0 : index
    %21 = vector.load %arg8[%c0_14, %c0_15] : memref<128x128xf32, #tpu.memory_space<vmem>>, vector<128x128xf32>
    tpu.vector_store %arg8[%c0_14, %c0_15], %20 {strides = array<i32>} : memref<128x128xf32, #tpu.memory_space<vmem>>, vector<128x128xf32>,
    %c0_i32_16 = arith.constant 0 : i32
    %22 = arith.cmpi eq, %arg1, %c0_i32_16 : i32
    %23 = arith.extui %22 : i1 to i32
    %c0_i32_17 = arith.constant 0 : i32
    %24 = arith.cmpi ne, %23, %c0_i32_17 : i32
    scf.if %24 {
      %c0_18 = arith.constant 0 : index
      %c0_19 = arith.constant 0 : index
      %25 = vector.load %arg8[%c0_18, %c0_19] : memref<128x128xf32, #tpu.memory_space<vmem>>, vector<128x128xf32>
      %c0_20 = arith.constant 0 : index
      %c0_21 = arith.constant 0 : index
      %26 = vector.load %arg6[%c0_20, %c0_21] : memref<1x128xf32, #tpu.memory_space<vmem>>, vector<1x128xf32>
      %27 = vector.broadcast %26 : vector<1x128xf32> to vector<128x128xf32>
      %28 = arith.addf %25, %27 : vector<128x128xf32>
      %c0_22 = arith.constant 0 : index
      %c0_23 = arith.constant 0 : index
      %29 = vector.load %arg7[%c0_22, %c0_23] : memref<128x128xf32, #tpu.memory_space<vmem>>, vector<128x128xf32>
      tpu.vector_store %arg7[%c0_22, %c0_23], %28 {strides = array<i32>} : memref<128x128xf32, #tpu.memory_space<vmem>>, vector<128x128xf32>,
    } else {
    }
    return
  }
  func.func @transform_0(%arg0: i32, %arg1: i32) -> (i32, i32) {
    %c0_i32 = arith.constant 0 : i32
    %c0_i32_0 = arith.constant 0 : i32
    return %arg0, %c0_i32 : i32, i32
  }
  func.func @transform_1(%arg0: i32, %arg1: i32) -> (i32, i32) {
    %c0_i32 = arith.constant 0 : i32
    %c0_i32_0 = arith.constant 0 : i32
    return %c0_i32, %arg1 : i32, i32
  }
  func.func @transform_2(%arg0: i32, %arg1: i32) -> (i32, i32) {
    %c0_i32 = arith.constant 0 : i32
    %c0_i32_0 = arith.constant 0 : i32
    return %c0_i32, %arg1 : i32, i32
  }
  func.func @transform_3(%arg0: i32, %arg1: i32) -> (i32, i32) {
    %c0_i32 = arith.constant 0 : i32
    %c0_i32_0 = arith.constant 0 : i32
    return %arg1, %c0_i32 : i32, i32
  }
  func.func @transform_4(%arg0: i32, %arg1: i32) -> (i32, i32) {
    %c0_i32 = arith.constant 0 : i32
    %c0_i32_0 = arith.constant 0 : i32
    %c0_i32_1 = arith.constant 0 : i32
    return %c0_i32, %c0_i32_0 : i32, i32
  }
  func.func @transform_5(%arg0: i32, %arg1: i32) -> (i32, i32) {
    %c0_i32 = arith.constant 0 : i32
    %c0_i32_0 = arith.constant 0 : i32
    return %arg0, %c0_i32 : i32, i32
  }
}

</mosaic_0001>

<bundles_post_ra>
// kernel: _mlp_pallas_impl.1
= control target key start
LH: loop header
LB: loop body
LE: loop exit
PB: predicated region body
PF: predicated region fallthrough
CT: control target
= control target key end

     0   :  { %s1988_s1 = inlined_call_operand.vmem [shape: f32[128,128], index: 1, kind: input, shape index: {}]   ;;  %s1989_s2 = inlined_call_operand.vmem [shape: f32[1,128], index: 2, kind: input, shape index: {}]   ;;  %s1990_s0 = inlined_call_operand.vmem [shape: f32[128,128], index: 0, kind: input, shape index: {}]   ;;  %s1991_s3 = inlined_call_operand.vmem [shape: f32[128,128], index: 3, kind: input, shape index: {}]   ;;  %s1992_s4 = inlined_call_operand.vmem [shape: f32[1,128], index: 4, kind: input, shape index: {}]   ;;  %s1993_s5 = inlined_call_operand.vmem [shape: f32[128,128], index: 5, kind: output, shape index: {}]  }
   0x1   :  { %v71_v0 = vld [vmem:[%s1988_s1 + $0x78] sm:$0xff]  ;;  %v70_v1 = vld [vmem:[%s1988_s1 + $0x70] sm:$0xff]  ;;  %v69_v2 = vld [vmem:[%s1988_s1 + $0x68] sm:$0xff] }
   0x2   :  { %76 = vmatpush.msra.mxu0 %v71_v0  ;;  %1049 = vmatpush.msra.mxu2 %v71_v0  ;;  %v68_v3 = vld [vmem:[%s1988_s1 + $0x60] sm:$0xff]  ;;  %v67_v4 = vld [vmem:[%s1988_s1 + $0x58] sm:$0xff]  ;;  %v66_v5 = vld [vmem:[%s1988_s1 + $0x50] sm:$0xff] }
   0x3   :  { %v65_v6 = vld [vmem:[%s1988_s1 + $0x48] sm:$0xff]  ;;  %v64_v7 = vld [vmem:[%s1988_s1 + $0x40] sm:$0xff]  ;;  %v63_v8 = vld [vmem:[%s1988_s1 + $0x38] sm:$0xff] }
   0x4   :  { %77 = vmatpush.msra.mxu0 %v70_v1  ;;  %1050 = vmatpush.msra.mxu2 %v70_v1  ;;  %v62_v9 = vld [vmem:[%s1988_s1 + $0x30] sm:$0xff]  ;;  %v61_v10 = vld [vmem:[%s1988_s1 + $0x28] sm:$0xff]  ;;  %v60_v11 = vld [vmem:[%s1988_s1 + $0x20] sm:$0xff] }
   0x5   :  { %v59_v12 = vld [vmem:[%s1988_s1 + $0x18] sm:$0xff]  ;;  %v58_v13 = vld [vmem:[%s1988_s1 + $0x10] sm:$0xff]  ;;  %v57_v14 = vld [vmem:[%s1988_s1 + $0x8] sm:$0xff] }
   0x6   :  { %78 = vmatpush.msra.mxu0 %v69_v2  ;;  %1051 = vmatpush.msra.mxu2 %v69_v2  ;;  %v56_v15 = vld [vmem:[%s1988_s1] sm:$0xff]  ;;  %v41_v18 = vld [vmem:[%s1990_s0 + $0x8] sm:$0xff]  ;;  %v42_v20 = vld [vmem:[%s1990_s0 + $0x10] sm:$0xff] }
   0x7   :  { %v40_v16 = vld [vmem:[%s1990_s0] sm:$0xff]  ;;  %v49_v19 = vld [vmem:[%s1990_s0 + $0x48] sm:$0xff]  ;;  %v50_v21 = vld [vmem:[%s1990_s0 + $0x50] sm:$0xff] }
   0x8   :  { %79 = vmatpush.msra.mxu0 %v68_v3  ;;  %1052 = vmatpush.msra.mxu2 %v68_v3  ;;  %v48_v17 = vld [vmem:[%s1990_s0 + $0x40] sm:$0xff]  ;;  %v43_v22 = vld [vmem:[%s1990_s0 + $0x18] sm:$0xff]  ;;  %v45_v26 = vld [vmem:[%s1990_s0 + $0x28] sm:$0xff] }
   0x9   :  { %v51_v23 = vld [vmem:[%s1990_s0 + $0x58] sm:$0xff]  ;;  %v44_v24 = vld [vmem:[%s1990_s0 + $0x20] sm:$0xff]  ;;  %v53_v27 = vld [vmem:[%s1990_s0 + $0x68] sm:$0xff] }
   0xa   :  { %80 = vmatpush.msra.mxu0 %v67_v4  ;;  %1053 = vmatpush.msra.mxu2 %v67_v4  ;;  %v52_v25 = vld [vmem:[%s1990_s0 + $0x60] sm:$0xff]  ;;  %v46_v28 = vld [vmem:[%s1990_s0 + $0x30] sm:$0xff]  ;;  %v47_v30 = vld [vmem:[%s1990_s0 + $0x38] sm:$0xff] }
   0xb   :  { %v54_v29 = vld [vmem:[%s1990_s0 + $0x70] sm:$0xff]  ;;  %v55_v31 = vld [vmem:[%s1990_s0 + $0x78] sm:$0xff]  ;;  %v874_v34 = vld [vmem:[%s1991_s3 + $0x68] sm:$0xff] }
   0xc   :  { %81 = vmatpush.msra.mxu0 %v66_v5  ;;  %1054 = vmatpush.msra.mxu2 %v66_v5  ;;  %v876_v32 = vld [vmem:[%s1991_s3 + $0x78] sm:$0xff]  ;;  %v875_v33 = vld [vmem:[%s1991_s3 + $0x70] sm:$0xff]  ;;  %v1253_v35 = vld [vmem:[%s1989_s2] ss:$0 sm:$0xff] }
   0xd   :  { %877 = vmatpush.msra.mxu1 %v876_v32  ;;  %1065 = vmatpush.msra.mxu3 %v876_v32  ;;  %v873_v36 = vld [vmem:[%s1991_s3 + $0x60] sm:$0xff]  ;;  %v872_v38 = vld [vmem:[%s1991_s3 + $0x58] sm:$0xff]  ;;  %v871_v40 = vld [vmem:[%s1991_s3 + $0x50] sm:$0xff] }
   0xe   :  { %82 = vmatpush.msra.mxu0 %v65_v6  ;;  %1055 = vmatpush.msra.mxu2 %v65_v6  ;;  %v870_v42 = vld [vmem:[%s1991_s3 + $0x48] sm:$0xff]  ;;  %v869_v45 = vld [vmem:[%s1991_s3 + $0x40] sm:$0xff]  ;;  %v868_v49 = vld [vmem:[%s1991_s3 + $0x38] sm:$0xff] }
   0xf   :  { %878 = vmatpush.msra.mxu1 %v875_v33  ;;  %1066 = vmatpush.msra.mxu3 %v875_v33  ;;  %v867_v56 = vld [vmem:[%s1991_s3 + $0x30] sm:$0xff]  ;;  %v866_v60 = vld [vmem:[%s1991_s3 + $0x28] sm:$0xff]  ;;  %v865_v2 = vld [vmem:[%s1991_s3 + $0x20] sm:$0xff] }
  0x10   :  { %83 = vmatpush.msra.mxu0 %v64_v7  ;;  %1056 = vmatpush.msra.mxu2 %v64_v7  ;;  %v864_v6 = vld [vmem:[%s1991_s3 + $0x18] sm:$0xff] }
  0x11   :  { %879 = vmatpush.msra.mxu1 %v874_v34  ;;  %1067 = vmatpush.msra.mxu3 %v874_v34 }
  0x12   :  { %84 = vmatpush.msra.mxu0 %v63_v8  ;;  %1057 = vmatpush.msra.mxu2 %v63_v8 }
  0x13   :  { %880 = vmatpush.msra.mxu1 %v873_v36  ;;  %1068 = vmatpush.msra.mxu3 %v873_v36 }
  0x14   :  { %85 = vmatpush.msra.mxu0 %v62_v9  ;;  %1058 = vmatpush.msra.mxu2 %v62_v9 }
  0x15   :  { %881 = vmatpush.msra.mxu1 %v872_v38  ;;  %1069 = vmatpush.msra.mxu3 %v872_v38 }
  0x16   :  { %86 = vmatpush.msra.mxu0 %v61_v10  ;;  %1059 = vmatpush.msra.mxu2 %v61_v10 }
  0x17   :  { %882 = vmatpush.msra.mxu1 %v871_v40  ;;  %1070 = vmatpush.msra.mxu3 %v871_v40 }
  0x18   :  { %87 = vmatpush.msra.mxu0 %v60_v11  ;;  %1060 = vmatpush.msra.mxu2 %v60_v11 }
  0x19   :  { %883 = vmatpush.msra.mxu1 %v870_v42  ;;  %1071 = vmatpush.msra.mxu3 %v870_v42 }
  0x1a   :  { %88 = vmatpush.msra.mxu0 %v59_v12  ;;  %1061 = vmatpush.msra.mxu2 %v59_v12  ;;  %v863_v12 = vld [vmem:[%s1991_s3 + $0x10] sm:$0xff] }
  0x1b   :  { %884 = vmatpush.msra.mxu1 %v869_v45  ;;  %1072 = vmatpush.msra.mxu3 %v869_v45 }
  0x1c   :  { %89 = vmatpush.msra.mxu0 %v58_v13  ;;  %1062 = vmatpush.msra.mxu2 %v58_v13 }
  0x1d   :  { %885 = vmatpush.msra.mxu1 %v868_v49  ;;  %1073 = vmatpush.msra.mxu3 %v868_v49 }
  0x1e   :  { %90 = vmatpush.msra.mxu0 %v57_v14  ;;  %1063 = vmatpush.msra.mxu2 %v57_v14 }
  0x1f   :  { %886 = vmatpush.msra.mxu1 %v867_v56  ;;  %1074 = vmatpush.msra.mxu3 %v867_v56 }
  0x20   :  { %91 = vmatpush.msra.mxu0 %v56_v15  ;;  %1064 = vmatpush.msra.mxu2 %v56_v15 }
  0x21   :  { %92 = vmatmul.f32.vlgmr.msra.gmra.mxu0 %v40_v16  ;;  %116 = vmatmul.f32.vlgmr.msra.gmra.mxu2 %v48_v17  ;;  %v862_v16 = vld [vmem:[%s1991_s3 + $0x8] sm:$0xff] }
  0x22   :  { %887 = vmatpush.msra.mxu1 %v866_v60  ;;  %1075 = vmatpush.msra.mxu3 %v866_v60 }
  0x24   :  { %888 = vmatpush.msra.mxu1 %v865_v2  ;;  %1076 = vmatpush.msra.mxu3 %v865_v2 }
  0x26   :  { %889 = vmatpush.msra.mxu1 %v864_v6  ;;  %1077 = vmatpush.msra.mxu3 %v864_v6 }
  0x28   :  { %890 = vmatpush.msra.mxu1 %v863_v12  ;;  %1078 = vmatpush.msra.mxu3 %v863_v12 }
  0x29   :  { %95 = vmatmul.f32.gmra.mxu0 %v41_v18  ;;  %119 = vmatmul.f32.gmra.mxu2 %v49_v19 }
  0x2a   :  { %891 = vmatpush.msra.mxu1 %v862_v16  ;;  %1079 = vmatpush.msra.mxu3 %v862_v16 }
  0x31   :  { %98 = vmatmul.f32.gmra.mxu0 %v42_v20  ;;  %122 = vmatmul.f32.gmra.mxu2 %v50_v21 }
  0x39   :  { %101 = vmatmul.f32.gmra.mxu0 %v43_v22  ;;  %125 = vmatmul.f32.gmra.mxu2 %v51_v23 }
  0x41   :  { %104 = vmatmul.f32.gmra.mxu0 %v44_v24  ;;  %128 = vmatmul.f32.gmra.mxu2 %v52_v25  ;;  %v861_v24 = vld [vmem:[%s1991_s3] sm:$0xff] }
  0x42   :  { %892 = vmatpush.msra.mxu1 %v861_v24  ;;  %1080 = vmatpush.msra.mxu3 %v861_v24 }
  0x49   :  { %107 = vmatmul.f32.gmra.mxu0 %v45_v26  ;;  %131 = vmatmul.f32.gmra.mxu2 %v53_v27 }
  0x51   :  { %110 = vmatmul.f32.gmra.mxu0 %v46_v28  ;;  %134 = vmatmul.f32.gmra.mxu2 %v54_v29 }
  0x59   :  { %113 = vmatmul.f32.gmra.mxu0 %v47_v30  ;;  %137 = vmatmul.f32.gmra.mxu2 %v55_v31 }
  0x9e   :  { %v93_v37 = vpop.f32.mrf.mxu0 }
  0x9f   :  { %v1262_v39 = vadd.f32 %v1253_v35, %v93_v37 }
  0xa1   :  { %v1268_v41 = vmul.f32 0.70710677, %v1262_v39  ;;  %v1401_v12 = vmul.f32 0.5, %v1262_v39 }
  0xa3   :  { %v173_v43 = vmul.f32 %v1268_v41, %v1268_v41 }
  0xa4   :  { %v117_v44 = vpop.f32.mrf.mxu2 }
  0xa5   :  { %v1278_v46 = vmin.f32 %v173_v43, 16.0  ;;  %v1281_v47 = vadd.f32 %v1253_v35, %v117_v44 }
  0xa6   :  { %v96_v48 = vpop.f32.mrf.mxu0 }
  0xa7   :  { %v1287_v50 = vmul.f32 0.70710677, %v1281_v47  ;;  %v1290_v51 = vadd.f32 %v1253_v35, %v96_v48  ;;  %v175_v52 = vmul.f32 2.1237322e-06, %v1278_v46  ;;  %v186_v53 = vmul.f32 3.8918573e-05, %v1278_v46 }
  0xa9   :  { %v493_v54 = vmul.f32 %v1287_v50, %v1287_v50  ;;  %v1297_v55 = vmul.f32 0.70710677, %v1290_v51  ;;  %v187_v57 = vadd.f32 0.001143296, %v186_v53  ;;  %v176_v61 = vadd.f32 0.00028619796, %v175_v52 }
  0xab   :  { %v1302_v58 = vmin.f32 %v493_v54, 16.0  ;;  %v213_v59 = vmul.f32 %v1297_v55, %v1297_v55  ;;  %v188_v63 = vmul.f32 %v187_v57, %v1278_v46  ;;  %v177_v7 = vmul.f32 %v176_v61, %v1278_v46 }
  0xac   :  { %v120_v62 = vpop.f32.mrf.mxu2 }
  0xad   :  { %v495_v0 = vmul.f32 2.1237322e-06, %v1302_v58  ;;  %v1312_v1 = vadd.f32 %v1253_v35, %v120_v62  ;;  %v1317_v3 = vmin.f32 %v213_v59, 16.0  ;;  %v189_v5 = vadd.f32 0.014752088, %v188_v63 }
  0xae   :  { %v99_v4 = vpop.f32.mrf.mxu0  ;;  %v178_v18 = vadd.f32 0.0036580483, %v177_v7 }
  0xaf   :  { %v1324_v8 = vmul.f32 0.70710677, %v1312_v1  ;;  %v1327_v9 = vadd.f32 %v1253_v35, %v99_v4  ;;  %v190_v10 = vmul.f32 %v189_v5, %v1278_v46  ;;  %v496_v11 = vadd.f32 0.00028619796, %v495_v0 }
  0xb0   :  { %v215_v13 = vmul.f32 2.1237322e-06, %v1317_v3  ;;  %v179_v30 = vmul.f32 %v178_v18, %v1278_v46  ;;  %v1407_v18 = vmul.f32 0.5, %v1281_v47 }
  0xb1   :  { %v533_v14 = vmul.f32 %v1324_v8, %v1324_v8  ;;  %v1337_v15 = vmul.f32 0.70710677, %v1327_v9  ;;  %v191_v17 = vadd.f32 0.112945676, %v190_v10  ;;  %v497_v22 = vmul.f32 %v496_v11, %v1302_v58 }
  0xb2   :  { %v216_v25 = vadd.f32 0.00028619796, %v215_v13  ;;  %v180_v43 = vadd.f32 0.05243302, %v179_v30 }
  0xb3   :  { %v1342_v19 = vmin.f32 %v533_v14, 16.0  ;;  %v253_v20 = vmul.f32 %v1337_v15, %v1337_v15  ;;  %v192_v29 = vmul.f32 %v191_v17, %v1278_v46  ;;  %v498_v33 = vadd.f32 0.0036580483, %v497_v22 }
  0xb4   :  { %v123_v21 = vpop.f32.mrf.mxu2  ;;  %v217_v34 = vmul.f32 %v216_v25, %v1317_v3  ;;  %v181_v60 = vmul.f32 %v180_v43, %v1278_v46 }
  0xb5   :  { %v1348_v23 = vadd.f32 %v1253_v35, %v123_v21  ;;  %v535_v26 = vmul.f32 2.1237322e-06, %v1342_v19  ;;  %v1354_v28 = vmin.f32 %v253_v20, 16.0  ;;  %v193_v42 = vadd.f32 0.4994258, %v192_v29 }
  0xb6   :  { %v102_v27 = vpop.f32.mrf.mxu0  ;;  %v499_v45 = vmul.f32 %v498_v33, %v1302_v58  ;;  %v218_v52 = vadd.f32 0.0036580483, %v217_v34  ;;  %v182_v13 = vadd.f32 0.18741608, %v181_v60  ;;  %v1425_v34 = vmul.f32 0.5, %v1290_v51 }
  0xb7   :  { %v1359_v31 = vmul.f32 0.70710677, %v1348_v23  ;;  %v1362_v32 = vadd.f32 %v1253_v35, %v102_v27  ;;  %v536_v36 = vadd.f32 0.00028619796, %v535_v26  ;;  %v255_v38 = vmul.f32 2.1237322e-06, %v1354_v28 }
  0xb8   :  { %v194_v59 = vmul.f32 %v193_v42, %v1278_v46  ;;  %v500_v63 = vadd.f32 0.05243302, %v499_v45  ;;  %v219_v2 = vmul.f32 %v218_v52, %v1317_v3  ;;  %v183_v33 = vmul.f32 %v182_v13, %v1278_v46 }
  0xb9   :  { %v573_v37 = vmul.f32 %v1359_v31, %v1359_v31  ;;  %v1369_v40 = vmul.f32 0.70710677, %v1362_v32  ;;  %v537_v53 = vmul.f32 %v536_v36, %v1342_v19  ;;  %v256_v57 = vadd.f32 0.00028619796, %v255_v38 }
  0xba   :  { %v1398_v11 = vadd.f32 1.0, %v194_v59  ;;  %v501_v20 = vmul.f32 %v500_v63, %v1302_v58  ;;  %v220_v24 = vadd.f32 0.05243302, %v219_v2  ;;  %v1428_v36 = vmul.f32 0.5, %v1312_v1 }
  0xbb   :  { %v293_v48 = vmul.f32 %v1369_v40, %v1369_v40  ;;  %v1378_v54 = vmin.f32 %v573_v37, 16.0  ;;  %v538_v4 = vadd.f32 0.0036580483, %v537_v53  ;;  %v257_v7 = vmul.f32 %v256_v57, %v1354_v28 }
  0xbc   :  { %v126_v44 = vpop.f32.mrf.mxu2  ;;  %1083 = vrcp.f32 %v1398_v11  ;;  %v502_v38 = vadd.f32 0.18741608, %v501_v20  ;;  %v221_v45 = vmul.f32 %v220_v24, %v1317_v3  ;;  %v1441_v51 = vmul.f32 3.8918573e-05, %v1302_v58 }
  0xbd   :  { %v1375_v49 = vadd.f32 %v1253_v35, %v126_v44  ;;  %v1382_v61 = vmin.f32 %v293_v48, 16.0  ;;  %v575_v5 = vmul.f32 2.1237322e-06, %v1378_v54  ;;  %v539_v39 = vmul.f32 %v538_v4, %v1342_v19 }
  0xbe   :  { %v105_v56 = vpop.f32.mrf.mxu0  ;;  %v258_v29 = vadd.f32 0.0036580483, %v257_v7  ;;  %v1437_v48 = vmul.f32 0.5, %v1327_v9  ;;  %v184_v57 = vadd.f32 1.1283791, %v183_v33  ;;  %v1448_v59 = vmul.f32 0.5, %v1348_v23 }
  0xbf   :  { %v1385_v62 = vmul.f32 0.70710677, %v1375_v49  ;;  %v1388_v0 = vadd.f32 %v1253_v35, %v105_v56  ;;  %v295_v14 = vmul.f32 2.1237322e-06, %v1382_v61  ;;  %v576_v25 = vadd.f32 0.00028619796, %v575_v5 }
  0xc0   :  { %v540_v1 = vadd.f32 0.05243302, %v539_v39  ;;  %v259_v52 = vmul.f32 %v258_v29, %v1354_v28  ;;  %v503_v4 = vmul.f32 %v502_v38, %v1302_v58  ;;  %v222_v13 = vadd.f32 0.18741608, %v221_v45 }
  0xc1   :  { %v613_v6 = vmul.f32 %v1385_v62, %v1385_v62  ;;  %v1396_v10 = vmul.f32 0.70710677, %v1388_v0  ;;  %v296_v37 = vadd.f32 0.00028619796, %v295_v14  ;;  %v577_v46 = vmul.f32 %v576_v25, %v1378_v54 }
  0xc2   :  { %v1454_v2 = vpop.eup %1083  ;;  %v1463_v14 = vmul.f32 0.5, %v1362_v32  ;;  %v260_v24 = vadd.f32 0.05243302, %v259_v52  ;;  %v1476_v32 = vmul.f32 %v184_v57, %v1268_v41  ;;  %vm201_vm1 = vweird.f32 %v1398_v11 }
  0xc3   :  { %v1404_v16 = vmin.f32 %v613_v6, 16.0  ;;  %v333_v21 = vmul.f32 %v1396_v10, %v1396_v10  ;;  %v297_v60 = vmul.f32 %v296_v37, %v1382_v61  ;;  %v578_v23 = vadd.f32 0.0036580483, %v577_v46 }
  0xc4   :  { %v129_v17 = vpop.f32.mrf.mxu2  ;;  %v197_v33 = vmul.f32 %v1454_v2, %v1398_v11  ;;  %v504_v37 = vadd.f32 1.1283791, %v503_v4  ;;  %v1484_v46 = vmul.f32 0.5, %v1375_v49  ;;  %vm202_vm0 = vweird.f32 %v1454_v2 }
  0xc5   :  { %v1413_v22 = vadd.f32 %v1253_v35, %v129_v17  ;;  %v615_v26 = vmul.f32 2.1237322e-06, %v1404_v16  ;;  %v1417_v30 = vmin.f32 %v333_v21, 16.0  ;;  %v541_v21 = vmul.f32 %v540_v1, %v1342_v19  ;;  %vm1541_vm2 = vmor %vm201_vm1, %vm202_vm0 }
  0xc6   :  { %v108_v27 = vpop.f32.mrf.mxu0  ;;  %v579_v45 = vmul.f32 %v578_v23, %v1378_v54  ;;  %v198_v49 = vsub.f32 1.0, %v197_v33 }
  0xc7   :  { %v1420_v47 = vmul.f32 0.70710677, %v1413_v22  ;;  %v616_v42 = vadd.f32 0.00028619796, %v615_v26  ;;  %v1433_v44 = vadd.f32 %v1253_v35, %v108_v27  ;;  %v335_v53 = vmul.f32 2.1237322e-06, %v1417_v30 }
  0xc8   :  { %v298_v26 = vadd.f32 0.0036580483, %v297_v60  ;;  %v542_v52 = vadd.f32 0.18741608, %v541_v21  ;;  %v261_v60 = vmul.f32 %v260_v24, %v1354_v28  ;;  %v580_v21 = vadd.f32 0.05243302, %v579_v45 }
  0xc9   :  { %v653_v43 = vmul.f32 %v1420_v47, %v1420_v47  ;;  %v1452_v9 = vmul.f32 0.70710677, %v1433_v44  ;;  %v617_v5 = vmul.f32 %v616_v42, %v1404_v16  ;;  %v336_v39 = vadd.f32 0.00028619796, %v335_v53 }
  0xcb   :  { %v1445_v56 = vmin.f32 %v653_v43, 16.0  ;;  %v373_v17 = vmul.f32 %v1452_v9, %v1452_v9  ;;  %v618_v38 = vadd.f32 0.0036580483, %v617_v5  ;;  %v223_v43 = vmul.f32 %v222_v13, %v1317_v3 }
  0xcc   :  { %v132_v63 = vpop.f32.mrf.mxu2  ;;  %v337_v53 = vmul.f32 %v336_v39, %v1417_v30 }
  0xcd   :  { %v655_v6 = vmul.f32 2.1237322e-06, %v1445_v56  ;;  %v1460_v7 = vadd.f32 %v1253_v35, %v132_v63  ;;  %v1468_v27 = vmin.f32 %v373_v17, 16.0  ;;  %v299_v63 = vmul.f32 %v298_v26, %v1382_v61 }
  0xce   :  { %v111_v20 = vpop.f32.mrf.mxu0  ;;  %v619_v13 = vmul.f32 %v618_v38, %v1404_v16  ;;  %v338_v26 = vadd.f32 0.0036580483, %v337_v53  ;;  %v1521_v53 = vmul.f32 0.5, %v1388_v0 }
  0xcf   :  { %v656_v25 = vadd.f32 0.00028619796, %v655_v6  ;;  %v1471_v29 = vadd.f32 %v1253_v35, %v111_v20  ;;  %v1479_v42 = vmul.f32 0.70710677, %v1460_v7  ;;  %v375_v1 = vmul.f32 2.1237322e-06, %v1468_v27 }
  0xd0   :  { %v1497_v6 = vmul.f32 %v504_v37, %v1287_v50  ;;  %v224_v20 = vadd.f32 1.1283791, %v223_v43  ;;  %v262_v37 = vadd.f32 0.18741608, %v261_v60  ;;  %v620_v43 = vadd.f32 0.05243302, %v619_v13 }
  0xd1   :  { %2000 = vst [vmem:[#allocation3_spill] sm:$0xff] %v1471_v29  ;;  %v657_v41 = vmul.f32 %v656_v25, %v1445_v56  ;;  %v693_v57 = vmul.f32 %v1479_v42, %v1479_v42  ;;  %v1494_v4 = vmul.f32 0.70710677, %v1471_v29  ;;  %v376_v23 = vadd.f32 0.00028619796, %v375_v1 }
  0xd2   :  { %v543_v25 = vmul.f32 %v542_v52, %v1342_v19  ;;  %v300_v29 = vadd.f32 0.05243302, %v299_v63  ;;  %v199_v1 = vmul.f32 %v1454_v2, %v198_v49  ;;  %v581_v52 = vmul.f32 %v580_v21, %v1378_v54  ;;  %2004 = vst [vmem:[#allocation7_spill] sm:$0xff] %v1521_v53 }
  0xd3   :  { %2001 = vst [vmem:[#allocation4_spill] sm:$0xff] %v1494_v4  ;;  %v1500_v17 = vmin.f32 %v693_v57, 16.0  ;;  %v413_v24 = vmul.f32 %v1494_v4, %v1494_v4  ;;  %v658_v33 = vadd.f32 0.0036580483, %v657_v41  ;;  %v377_v45 = vmul.f32 %v376_v23, %v1468_v27 }
  0xd4   :  { %v135_v5 = vpop.f32.mrf.mxu2  ;;  %v1524_v60 = vadd.f32 1.1283791, %v543_v25  ;;  %v339_v63 = vmul.f32 %v338_v26, %v1417_v30  ;;  %v263_v0 = vmul.f32 %v262_v37, %v1354_v28  ;;  %v301_v21 = vmul.f32 %v300_v29, %v1382_v61 }
  0xd5   :  { %v1505_v39 = vadd.f32 %v1253_v35, %v135_v5  ;;  %v695_v50 = vmul.f32 2.1237322e-06, %v1500_v17  ;;  %v1509_v38 = vmin.f32 %v413_v24, 16.0  ;;  %v1517_v5 = vmul.f32 %v224_v20, %v1297_v55 }
  0xd6   :  { %v659_v49 = vmul.f32 %v658_v33, %v1445_v56  ;;  %v200_v20 = vadd.f32 %v1454_v2, %v199_v1  ;;  %v621_v24 = vmul.f32 %v620_v43, %v1404_v16  ;;  %v378_v25 = vadd.f32 0.0036580483, %v377_v45 }
  0xd7   :  { %2002 = vst [vmem:[#allocation5_spill] sm:$0xff] %v1505_v39  ;;  %v696_v57 = vadd.f32 0.00028619796, %v695_v50  ;;  %v1514_v4 = vmul.f32 0.70710677, %v1505_v39  ;;  %v207_v29 = vand.u32 2147483648, %v1398_v11  ;;  %v114_v39 = vpop.f32.mrf.mxu0 }
  0xd8   :  { %v415_v41 = vmul.f32 2.1237322e-06, %v1509_v38  ;;  %v582_v26 = vadd.f32 0.18741608, %v581_v52  ;;  %v205_v33 = vand.u32 2147483647, %v1398_v11  ;;  %v204_v45 = vsel %vm1541_vm2, %v1454_v2, %v200_v20 }
  0xd9   :  { %2003 = vst [vmem:[#allocation6_spill] sm:$0xff] %v1514_v4  ;;  %v697_v13 = vmul.f32 %v696_v57, %v1500_v17  ;;  %v733_v55 = vmul.f32 %v1514_v4, %v1514_v4  ;;  %v340_v57 = vadd.f32 0.05243302, %v339_v63  ;;  %v660_v1 = vadd.f32 0.05243302, %v659_v49 }
  0xda   :  { %v416_v23 = vadd.f32 0.00028619796, %v415_v41  ;;  %v1539_v41 = vmul.f32 0.5, %v1413_v22  ;;  %v507_v52 = vadd.f32 0.001143296, %v1441_v51  ;;  %v379_v49 = vmul.f32 %v378_v25, %v1468_v27 }
  0xdb   :  { %v698_v50 = vadd.f32 0.0036580483, %v697_v13  ;;  %v1547_v43 = vmin.f32 %v733_v55, 16.0  ;;  %v302_v63 = vadd.f32 0.18741608, %v301_v21  ;;  %v208_v13 = vor.u32 1.1754944e-38, %v207_v29 }
  0xdc   :  { %2005 = vst [vmem:[#allocation8_spill] sm:$0xff] %v1539_v41  ;;  %v417_v37 = vmul.f32 %v416_v23, %v1509_v38  ;;  %v622_v22 = vadd.f32 0.18741608, %v621_v24  ;;  %v264_v4 = vadd.f32 1.1283791, %v263_v0  ;;  %v583_v41 = vmul.f32 %v582_v26, %v1378_v54 }
  0xdd   :  { %v699_v11 = vmul.f32 %v698_v50, %v1500_v17  ;;  %vm206_vm3 = vcmp.eq.f32.partialorder %v205_v33, 8.507059e+37  ;;  %v341_v23 = vmul.f32 %v340_v57, %v1417_v30  ;;  %v661_v55 = vmul.f32 %v660_v1, %v1445_v56 }
  0xde   :  { %v209_v53 = vsel %vm206_vm3, %v208_v13, %v204_v45  ;;  %v508_v2 = vmul.f32 %v507_v52, %v1302_v58  ;;  %v1560_v51 = vmul.f32 0.5, %v1433_v44  ;;  %v418_v20 = vadd.f32 0.0036580483, %v417_v37 }
  0xdf   :  { %v735_v21 = vmul.f32 2.1237322e-06, %v1547_v43  ;;  %v210_v0 = vmul.f32 %v209_v53, %v1476_v32  ;;  %v303_v24 = vmul.f32 %v302_v63, %v1382_v61  ;;  %v623_v25 = vmul.f32 %v622_v22, %v1404_v16 }
  0xe0   :  { %v380_v26 = vadd.f32 0.05243302, %v379_v49  ;;  %v509_v50 = vadd.f32 0.014752088, %v508_v2  ;;  %v584_v33 = vadd.f32 1.1283791, %v583_v41  ;;  %v1567_v29 = vadd.f32 %v1253_v35, %v114_v39 }
  0xe1   :  { %v700_v57 = vadd.f32 0.05243302, %v699_v11  ;;  %v1033_v1 = vclamps-f32 %v210_v0, 1.0  ;;  %v342_v45 = vadd.f32 0.18741608, %v341_v23  ;;  %v1572_v32 = vmul.f32 0.5, %v1460_v7 }
  0xe2   :  { %2008 = vst [vmem:[#allocation9_spill] sm:$0xff] %v1567_v29  ;;  %v662_v44 = vadd.f32 0.18741608, %v661_v55  ;;  %v510_v37 = vmul.f32 %v509_v50, %v1302_v58  ;;  %v226_v52 = vmul.f32 3.8918573e-05, %v1317_v3  ;;  %v419_v53 = vmul.f32 %v418_v20, %v1509_v38 }
  0xe3   :  { %v736_v63 = vadd.f32 0.00028619796, %v735_v21  ;;  %v813_v22 = vadd.f32 1.0, %v1033_v1  ;;  %v304_v49 = vadd.f32 1.1283791, %v303_v24  ;;  %v381_v13 = vmul.f32 %v380_v26, %v1468_v27 }
  0xe4   :  { %v624_v41 = vadd.f32 1.1283791, %v623_v25  ;;  %v511_v11 = vadd.f32 0.112945676, %v510_v37  ;;  %v701_v39 = vmul.f32 %v700_v57, %v1500_v17  ;;  %v1579_v55 = vmul.f32 0.70710677, %v1567_v29 }
  0xe5   :  { %v829_v23 = vmul.f32 %v813_v22, %v1401_v12  ;;  %v227_v2 = vadd.f32 0.001143296, %v226_v52  ;;  %v343_v7 = vmul.f32 %v342_v45, %v1417_v30  ;;  %v663_v0 = vmul.f32 %v662_v44, %v1445_v56 }
  0xe6   :  { %v512_v20 = vmul.f32 %v511_v11, %v1302_v58  ;;  %v546_v21 = vmul.f32 3.8918573e-05, %v1342_v19  ;;  %v420_v24 = vadd.f32 0.05243302, %v419_v53  ;;  %v737_v25 = vmul.f32 %v736_v63, %v1547_v43 }
  0xe7   :  { %893 = vmatmul.f32.vlgmr.msra.gmra.mxu1 %v829_v23  ;;  %v228_v26 = vmul.f32 %v227_v2, %v1317_v3  ;;  %v266_v12 = vmul.f32 3.8918573e-05, %v1354_v28  ;;  %v1590_v50 = vmul.f32 %v1524_v60, %v1324_v8  ;;  %v382_v57 = vadd.f32 0.18741608, %v381_v13 }
  0xe8   :  { %v513_v1 = vadd.f32 0.4994258, %v512_v20  ;;  %v547_v45 = vadd.f32 0.001143296, %v546_v21  ;;  %v702_v44 = vadd.f32 0.18741608, %v701_v39  ;;  %v453_v37 = vmul.f32 %v1579_v55, %v1579_v55  ;;  %v138_v21 = vpop.f32.mrf.mxu2 }
  0xe9   :  { %v229_v52 = vadd.f32 0.014752088, %v228_v26  ;;  %v267_v53 = vadd.f32 0.001143296, %v266_v12  ;;  %v1595_v63 = vmul.f32 %v264_v4, %v1337_v15  ;;  %v344_v22 = vadd.f32 1.1283791, %v343_v7 }
  0xea   :  { %v664_v11 = vadd.f32 1.1283791, %v663_v0  ;;  %v514_v23 = vmul.f32 %v513_v1, %v1302_v58  ;;  %v421_v2 = vmul.f32 %v420_v24, %v1509_v38  ;;  %v738_v8 = vadd.f32 0.0036580483, %v737_v25 }
  0xeb   :  { %v230_v60 = vmul.f32 %v229_v52, %v1317_v3  ;;  %v548_v13 = vmul.f32 %v547_v45, %v1342_v19  ;;  %v383_v39 = vmul.f32 %v382_v57, %v1468_v27  ;;  %v268_v26 = vmul.f32 %v267_v53, %v1354_v28 }
  0xec   :  { %v1602_v20 = vadd.f32 1.0, %v514_v23  ;;  %v586_v15 = vmul.f32 3.8918573e-05, %v1378_v54  ;;  %v703_v4 = vmul.f32 %v702_v44, %v1500_v17  ;;  %v1607_v7 = vmin.f32 %v453_v37, 16.0 }
  0xed   :  { %v231_v58 = vadd.f32 0.112945676, %v230_v60  ;;  %v549_v0 = vadd.f32 0.014752088, %v548_v13  ;;  %v1610_v24 = vmul.f32 %v584_v33, %v1359_v31  ;;  %v1613_v25 = vmul.f32 %v304_v49, %v1369_v40 }
  0xee   :  { %v1616_v12 = vmul.f32 %v624_v41, %v1385_v62  ;;  %1085 = vrcp.f32 %v1602_v20  ;;  %v422_v57 = vadd.f32 0.18741608, %v421_v2  ;;  %v739_v1 = vmul.f32 %v738_v8, %v1547_v43 }
  0xef   :  { %v1621_v45 = vadd.f32 %v1253_v35, %v138_v21  ;;  %v232_v44 = vmul.f32 %v231_v58, %v1317_v3  ;;  %v1625_v37 = vmul.f32 %v344_v22, %v1396_v10  ;;  %v550_v31 = vmul.f32 %v549_v0, %v1342_v19 }
  0xf0   :  { %v269_v40 = vadd.f32 0.014752088, %v268_v26  ;;  %v587_v33 = vadd.f32 0.001143296, %v586_v15  ;;  %v1629_v62 = vmul.f32 %v664_v11, %v1420_v47  ;;  %v384_v49 = vadd.f32 1.1283791, %v383_v39 }
  0xf1   :  { %2009 = vst [vmem:[#allocation10_spill] sm:$0xff] %v1621_v45  ;;  %v704_v41 = vadd.f32 1.1283791, %v703_v4  ;;  %v455_v52 = vmul.f32 2.1237322e-06, %v1607_v7  ;;  %v423_v10 = vmul.f32 %v422_v57, %v1509_v38  ;;  %vm521_vm5 = vweird.f32 %v1602_v20 }
  0xf2   :  { %v233_v53 = vadd.f32 0.4994258, %v232_v44  ;;  %v551_v23 = vadd.f32 0.112945676, %v550_v31  ;;  %v270_v35 = vmul.f32 %v269_v40, %v1354_v28  ;;  %v588_v2 = vmul.f32 %v587_v33, %v1378_v54 }
  0xf3   :  { %v740_v22 = vadd.f32 0.05243302, %v739_v1  ;;  %v1636_v8 = vmul.f32 0.70710677, %v1621_v45  ;;  %v306_v60 = vmul.f32 3.8918573e-05, %v1382_v61  ;;  %v1642_v26 = vmul.f32 %v384_v49, %v1452_v9 }
  0xf4   :  { %v1086_v47 = vpop.eup %1085  ;;  %v234_v11 = vmul.f32 %v233_v53, %v1317_v3  ;;  %v552_v13 = vmul.f32 %v551_v23, %v1342_v19  ;;  %v271_v39 = vadd.f32 0.112945676, %v270_v35  ;;  %v589_v21 = vadd.f32 0.014752088, %v588_v2 }
  0xf5   :  { %v1645_v15 = vmul.f32 %v704_v41, %v1479_v42  ;;  %v456_v4 = vadd.f32 0.00028619796, %v455_v52  ;;  %v517_v58 = vmul.f32 %v1086_v47, %v1602_v20  ;;  %v1652_v44 = vadd.f32 1.1283791, %v423_v10 }
  0xf6   :  { %v1648_v0 = vadd.f32 1.0, %v234_v11  ;;  %v553_v57 = vadd.f32 0.4994258, %v552_v13  ;;  %v272_v1 = vmul.f32 %v271_v39, %v1354_v28  ;;  %v590_v3 = vmul.f32 %v589_v21, %v1378_v54 }
  0xf7   :  { %v741_v31 = vmul.f32 %v740_v22, %v1547_v43  ;;  %v518_v40 = vsub.f32 1.0, %v517_v58  ;;  %v307_v9 = vadd.f32 0.001143296, %v306_v60  ;;  %v525_v33 = vand.u32 2147483647, %v1602_v20 }
  0xf8   :  { %v527_v42 = vand.u32 2147483648, %v1602_v20  ;;  %v773_v49 = vmul.f32 %v1636_v8, %v1636_v8  ;;  %1087 = vrcp.f32 %v1648_v0  ;;  %vm522_vm4 = vweird.f32 %v1086_v47 }
  0xf9   :  { %v519_v41 = vmul.f32 %v1086_v47, %v518_v40  ;;  %v554_v52 = vmul.f32 %v553_v57, %v1342_v19  ;;  %v273_v53 = vadd.f32 0.4994258, %v272_v1  ;;  %v457_v23 = vmul.f32 %v456_v4, %v1607_v7  ;;  %vm523_vm6 = vmor %vm521_vm5, %vm522_vm4 }
  0xfa   :  { %v591_v35 = vadd.f32 0.112945676, %v590_v3  ;;  %v308_v2 = vmul.f32 %v307_v9, %v1382_v61  ;;  %v626_v10 = vmul.f32 3.8918573e-05, %v1404_v16  ;;  %v1668_v13 = vadd.f32 0.18741608, %v741_v31 }
  0xfb   :  { %v520_v22 = vadd.f32 %v1086_v47, %v519_v41  ;;  %v1665_v60 = vadd.f32 1.0, %v554_v52  ;;  %v274_v11 = vmul.f32 %v273_v53, %v1354_v28  ;;  %vm526_vm7 = vcmp.eq.f32.partialorder %v525_v33, 8.507059e+37 }
  0xfc   :  { %v528_v19 = vor.u32 1.1754944e-38, %v527_v42  ;;  %v1670_v39 = vmin.f32 %v773_v49, 16.0  ;;  %v245_v4 = vand.u32 2147483647, %v1648_v0  ;;  %v592_v58 = vmul.f32 %v591_v35, %v1378_v54 }
  0xfd   :  { %v524_v21 = vsel %vm523_vm6, %v1086_v47, %v520_v22  ;;  %1089 = vrcp.f32 %v1665_v60  ;;  %v1675_v1 = vadd.f32 1.0, %v274_v11  ;;  %v309_v3 = vadd.f32 0.014752088, %v308_v2 }
  0xfe   :  { %v1088_v57 = vpop.eup %1087  ;;  %v529_v20 = vsel %vm526_vm7, %v528_v19, %v524_v21  ;;  %v627_v28 = vadd.f32 0.001143296, %v626_v10  ;;  %v1677_v31 = vadd.f32 0.0036580483, %v457_v23  ;;  %v247_v47 = vand.u32 2147483648, %v1648_v0 }
  0xff   :  { %v530_v40 = vmul.f32 %v529_v20, %v1497_v6  ;;  %v237_v9 = vmul.f32 %v1088_v57, %v1648_v0  ;;  %v1683_v33 = vmul.f32 2.1237322e-06, %v1670_v39  ;;  %vm241_vm8 = vweird.f32 %v1648_v0 }
 0x100   :  { %v565_v42 = vand.u32 2147483647, %v1665_v60  ;;  %1091 = vrcp.f32 %v1675_v1  ;;  %vm1688_vm9 = vcmp.eq.f32.partialorder %v245_v4, 8.507059e+37  ;;  %v567_v6 = vand.u32 2147483648, %v1665_v60 }
 0x101   :  { %v1041_v49 = vclamps-f32 %v530_v40, 1.0  ;;  %v238_v41 = vsub.f32 1.0, %v237_v9  ;;  %v593_v53 = vadd.f32 0.4994258, %v592_v58  ;;  %v310_v23 = vmul.f32 %v309_v3, %v1382_v61 }
 0x102   :  { %v628_v35 = vmul.f32 %v627_v28, %v1404_v16  ;;  %v346_v2 = vmul.f32 3.8918573e-05, %v1417_v30  ;;  %vm242_vm10 = vweird.f32 %v1088_v57  ;;  %v248_v19 = vor.u32 1.1754944e-38, %v247_v47 }
 0x103   :  { %v1090_v10 = vpop.eup %1089  ;;  %v821_v22 = vadd.f32 1.0, %v1041_v49  ;;  %v239_v11 = vmul.f32 %v1088_v57, %v238_v41  ;;  %vm561_vm11 = vweird.f32 %v1665_v60  ;;  %vm1698_vm12 = vcmp.eq.f32.partialorder %v565_v42, 8.507059e+37  ;;  %vm243_vm13 = vmor %vm241_vm8, %vm242_vm10 }
 0x104   :  { %v557_v21 = vmul.f32 %v1090_v10, %v1665_v60  ;;  %v594_v58 = vmul.f32 %v593_v53, %v1378_v54  ;;  %v568_v28 = vor.u32 1.1754944e-38, %v567_v6  ;;  %v311_v40 = vadd.f32 0.112945676, %v310_v23 }
 0x105   :  { %v837_v20 = vmul.f32 %v821_v22, %v1407_v18  ;;  %v240_v3 = vadd.f32 %v1088_v57, %v239_v11  ;;  %v629_v41 = vadd.f32 0.014752088, %v628_v35  ;;  %v347_v45 = vadd.f32 0.001143296, %v346_v2 }
 0x106   :  { %v1092_v9 = vpop.eup %1091  ;;  %v558_v47 = vsub.f32 1.0, %v557_v21  ;;  %v1706_v49 = vadd.f32 1.0, %v594_v58  ;;  %v285_v54 = vand.u32 2147483647, %v1675_v1  ;;  %v312_v18 = vmul.f32 %v311_v40, %v1382_v61 }
 0x107   :  { %917 = vmatmul.f32.vlgmr.msra.gmra.mxu3 %v837_v20  ;;  %v244_v42 = vsel %vm243_vm13, %v1088_v57, %v240_v3  ;;  %v277_v29 = vmul.f32 %v1092_v9, %v1675_v1  ;;  %vm562_vm14 = vweird.f32 %v1090_v10  ;;  %vm281_vm15 = vweird.f32 %v1675_v1 }
 0x108   :  { %v249_v6 = vsel %vm1688_vm9, %v248_v19, %v244_v42  ;;  %v559_v53 = vmul.f32 %v1090_v10, %v558_v47  ;;  %1093 = vrcp.f32 %v1706_v49  ;;  %v287_v57 = vand.u32 2147483648, %v1675_v1  ;;  %vm563_vm0 = vmor %vm561_vm11, %vm562_vm14 }
 0x109   :  { %v250_v0 = vmul.f32 %v249_v6, %v1517_v5  ;;  %v278_v23 = vsub.f32 1.0, %v277_v29  ;;  %v313_v2 = vadd.f32 0.4994258, %v312_v18  ;;  %v630_v22 = vmul.f32 %v629_v41, %v1404_v16 }
 0x10a   :  { %v560_v35 = vadd.f32 %v1090_v10, %v559_v53  ;;  %v348_v11 = vmul.f32 %v347_v45, %v1417_v30  ;;  %vm282_vm1 = vweird.f32 %v1092_v9  ;;  %vm1721_vm2 = vcmp.eq.f32.partialorder %v285_v54, 8.507059e+37 }
 0x10b   :  { %v1034_v21 = vclamps-f32 %v250_v0, 1.0  ;;  %v279_v52 = vmul.f32 %v1092_v9, %v278_v23  ;;  %v314_v29 = vmul.f32 %v313_v2, %v1382_v61  ;;  %v631_v58 = vadd.f32 0.112945676, %v630_v22  ;;  %vm283_vm3 = vmor %vm281_vm15, %vm282_vm1 }
 0x10c   :  { %v564_v5 = vsel %vm563_vm0, %v1090_v10, %v560_v35  ;;  %v349_v20 = vadd.f32 0.014752088, %v348_v11  ;;  %v288_v47 = vor.u32 1.1754944e-38, %v287_v57  ;;  %v666_v1 = vmul.f32 3.8918573e-05, %v1445_v56 }
 0x10d   :  { %v814_v3 = vadd.f32 1.0, %v1034_v21  ;;  %v569_v40 = vsel %vm1698_vm12, %v568_v28, %v564_v5  ;;  %v280_v45 = vadd.f32 %v1092_v9, %v279_v52  ;;  %v1731_v42 = vadd.f32 1.0, %v314_v29 }
 0x10e   :  { %v1094_v41 = vpop.eup %1093  ;;  %v570_v60 = vmul.f32 %v569_v40, %v1590_v50  ;;  %v632_v10 = vmul.f32 %v631_v58, %v1404_v16  ;;  %v350_v61 = vmul.f32 %v349_v20, %v1417_v30  ;;  %v605_v28 = vand.u32 2147483647, %v1706_v49 }
 0x10f   :  { %v830_v54 = vmul.f32 %v814_v3, %v1425_v34  ;;  %v284_v18 = vsel %vm283_vm3, %v1092_v9, %v280_v45  ;;  %v597_v4 = vmul.f32 %v1094_v41, %v1706_v49  ;;  %1095 = vrcp.f32 %v1731_v42 }
 0x110   :  { %v1042_v6 = vclamps-f32 %v570_v60, 1.0  ;;  %v289_v50 = vsel %vm1721_vm2, %v288_v47, %v284_v18  ;;  %v1743_v53 = vadd.f32 0.00028619796, %v1683_v33  ;;  %v607_v9 = vand.u32 2147483648, %v1706_v49 }
 0x111   :  { %896 = vmatmul.f32.gmra.mxu1 %v830_v54  ;;  %v290_v0 = vmul.f32 %v289_v50, %v1595_v63  ;;  %v598_v34 = vsub.f32 1.0, %v597_v4  ;;  %vm601_vm4 = vweird.f32 %v1706_v49  ;;  %v633_v57 = vadd.f32 0.4994258, %v632_v10 }
 0x112   :  { %v822_v23 = vadd.f32 1.0, %v1042_v6  ;;  %v351_v35 = vadd.f32 0.112945676, %v350_v61  ;;  %vm602_vm5 = vweird.f32 %v1094_v41  ;;  %vm1748_vm6 = vcmp.eq.f32.partialorder %v605_v28, 8.507059e+37 }
 0x113   :  { %v1035_v2 = vclamps-f32 %v290_v0, 1.0  ;;  %v599_v22 = vmul.f32 %v1094_v41, %v598_v34  ;;  %v634_v21 = vmul.f32 %v633_v57, %v1404_v16  ;;  %v667_v52 = vadd.f32 0.001143296, %v666_v1  ;;  %vm603_vm7 = vmor %vm601_vm4, %vm602_vm5 }
 0x114   :  { %v838_v33 = vmul.f32 %v822_v23, %v1428_v36  ;;  %v352_v63 = vmul.f32 %v351_v35, %v1417_v30  ;;  %v608_v29 = vor.u32 1.1754944e-38, %v607_v9  ;;  %v325_v58 = vand.u32 2147483647, %v1731_v42 }
 0x115   :  { %v815_v19 = vadd.f32 1.0, %v1035_v2  ;;  %v600_v5 = vadd.f32 %v1094_v41, %v599_v22  ;;  %v1096_v20 = vpop.eup %1095  ;;  %v1758_v3 = vadd.f32 1.0, %v634_v21  ;;  %v668_v36 = vmul.f32 %v667_v52, %v1445_v56 }
 0x116   :  { %920 = vmatmul.f32.gmra.mxu3 %v838_v33  ;;  %v353_v40 = vadd.f32 0.4994258, %v352_v63  ;;  %v386_v16 = vmul.f32 3.8918573e-05, %v1468_v27  ;;  %v317_v60 = vmul.f32 %v1096_v20, %v1731_v42  ;;  %vm321_vm8 = vweird.f32 %v1731_v42 }
 0x117   :  { %v831_v45 = vmul.f32 %v815_v19, %v1437_v48  ;;  %v604_v47 = vsel %vm603_vm7, %v1094_v41, %v600_v5  ;;  %v327_v49 = vand.u32 2147483648, %v1731_v42  ;;  %1097 = vrcp.f32 %v1758_v3 }
 0x118   :  { %v609_v10 = vsel %vm1748_vm6, %v608_v29, %v604_v47  ;;  %v706_v61 = vmul.f32 3.8918573e-05, %v1500_v17  ;;  %v318_v18 = vsub.f32 1.0, %v317_v60  ;;  %vm1771_vm9 = vcmp.eq.f32.partialorder %v325_v58, 8.507059e+37 }
 0x119   :  { %899 = vmatmul.f32.gmra.mxu1 %v831_v45  ;;  %v610_v54 = vmul.f32 %v609_v10, %v1610_v24  ;;  %v354_v41 = vmul.f32 %v353_v40, %v1417_v30  ;;  %vm322_vm10 = vweird.f32 %v1096_v20  ;;  %v669_v4 = vadd.f32 0.014752088, %v668_v36 }
 0x11a   :  { %v387_v28 = vadd.f32 0.001143296, %v386_v16  ;;  %v426_v6 = vmul.f32 3.8918573e-05, %v1509_v38  ;;  %v319_v1 = vmul.f32 %v1096_v20, %v318_v18  ;;  %v645_v0 = vand.u32 2147483647, %v1758_v3  ;;  %vm323_vm11 = vmor %vm321_vm8, %vm322_vm10 }
 0x11b   :  { %v1043_v50 = vclamps-f32 %v610_v54, 1.0  ;;  %v1778_v34 = vadd.f32 1.0, %v354_v41  ;;  %v328_v9 = vor.u32 1.1754944e-38, %v327_v49  ;;  %v647_v24 = vand.u32 2147483648, %v1758_v3 }
 0x11c   :  { %v670_v23 = vmul.f32 %v669_v4, %v1445_v56  ;;  %v707_v57 = vadd.f32 0.001143296, %v706_v61  ;;  %v320_v2 = vadd.f32 %v1096_v20, %v319_v1  ;;  %v388_v30 = vmul.f32 %v387_v28, %v1468_v27 }
 0x11d   :  { %v823_v35 = vadd.f32 1.0, %v1043_v50  ;;  %1099 = vrcp.f32 %v1778_v34  ;;  %v1098_v22 = vpop.eup %1097  ;;  %vm641_vm12 = vweird.f32 %v1758_v3  ;;  %v427_v21 = vadd.f32 0.001143296, %v426_v6 }
 0x11e   :  { %v671_v11 = vadd.f32 0.112945676, %v670_v23  ;;  %v708_v33 = vmul.f32 %v707_v57, %v1500_v17  ;;  %v324_v52 = vsel %vm323_vm11, %v1096_v20, %v320_v2  ;;  %v637_v19 = vmul.f32 %v1098_v22, %v1758_v3 }
 0x11f   :  { %v839_v63 = vmul.f32 %v823_v35, %v1448_v59  ;;  %vm1791_vm13 = vcmp.eq.f32.partialorder %v645_v0, 8.507059e+37  ;;  %v329_v29 = vsel %vm1771_vm9, %v328_v9, %v324_v52  ;;  %v648_v42 = vor.u32 1.1754944e-38, %v647_v24 }
 0x120   :  { %v365_v58 = vand.u32 2147483647, %v1778_v34  ;;  %v672_v40 = vmul.f32 %v671_v11, %v1445_v56  ;;  %v330_v36 = vmul.f32 %v329_v29, %v1613_v25  ;;  %v638_v16 = vsub.f32 1.0, %v637_v19 }
 0x121   :  { %923 = vmatmul.f32.gmra.mxu3 %v839_v63  ;;  %v389_v59 = vadd.f32 0.014752088, %v388_v30  ;;  %v709_v20 = vadd.f32 0.014752088, %v708_v33  ;;  %vm642_vm14 = vweird.f32 %v1098_v22  ;;  %v428_v47 = vmul.f32 %v427_v21, %v1509_v38 }
 0x122   :  { %v673_v45 = vadd.f32 0.4994258, %v672_v40  ;;  %v746_v60 = vmul.f32 3.8918573e-05, %v1547_v43  ;;  %v1036_v49 = vclamps-f32 %v330_v36, 1.0  ;;  %v639_v61 = vmul.f32 %v1098_v22, %v638_v16  ;;  %vm643_vm15 = vmor %vm641_vm12, %vm642_vm14 }
 0x123   :  { %v1100_v10 = vpop.eup %1099  ;;  %v390_v54 = vmul.f32 %v389_v59, %v1468_v27  ;;  %v710_v18 = vmul.f32 %v709_v20, %v1500_v17  ;;  %v367_v25 = vand.u32 2147483648, %v1778_v34  ;;  %v429_v4 = vadd.f32 0.014752088, %v428_v47 }
 0x124   :  { %v357_v48 = vmul.f32 %v1100_v10, %v1778_v34  ;;  %v674_v41 = vmul.f32 %v673_v45, %v1445_v56  ;;  %v816_v28 = vadd.f32 1.0, %v1036_v49  ;;  %v640_v6 = vadd.f32 %v1098_v22, %v639_v61  ;;  %v2024_v61 = vld [vmem:[#allocation4_spill] sm:$0xff] }
 0x125   :  { %v391_v50 = vadd.f32 0.112945676, %v390_v54  ;;  %v711_v1 = vadd.f32 0.112945676, %v710_v18  ;;  %v430_v24 = vmul.f32 %v429_v4, %v1509_v38  ;;  %v747_v23 = vadd.f32 0.001143296, %v746_v60 }
 0x126   :  { %v358_v0 = vsub.f32 1.0, %v357_v48  ;;  %v1810_v9 = vadd.f32 1.0, %v674_v41  ;;  %v832_v57 = vmul.f32 %v816_v28, %v1463_v14  ;;  %v644_v35 = vsel %vm643_vm15, %v1098_v22, %v640_v6 }
 0x127   :  { %v392_v56 = vmul.f32 %v391_v50, %v1468_v27  ;;  %v712_v2 = vmul.f32 %v711_v1, %v1500_v17  ;;  %v649_v30 = vsel %vm1791_vm13, %v648_v42, %v644_v35  ;;  %vm362_vm0 = vweird.f32 %v1100_v10 }
 0x128   :  { %v359_v11 = vmul.f32 %v1100_v10, %v358_v0  ;;  %1101 = vrcp.f32 %v1810_v9  ;;  %902 = vmatmul.f32.gmra.mxu1 %v832_v57  ;;  %v650_v3 = vmul.f32 %v649_v30, %v1616_v12  ;;  %vm361_vm1 = vweird.f32 %v1778_v34 }
 0x129   :  { %vm1821_vm2 = vcmp.eq.f32.partialorder %v365_v58, 8.507059e+37  ;;  %v393_v14 = vadd.f32 0.4994258, %v392_v56  ;;  %v713_v21 = vadd.f32 0.4994258, %v712_v2  ;;  %v748_v52 = vmul.f32 %v747_v23, %v1547_v43  ;;  %vm363_vm3 = vmor %vm361_vm1, %vm362_vm0 }
 0x12a   :  { %v360_v22 = vadd.f32 %v1100_v10, %v359_v11  ;;  %v431_v63 = vadd.f32 0.112945676, %v430_v24  ;;  %v1044_v19 = vclamps-f32 %v650_v3, 1.0  ;;  %v368_v5 = vor.u32 1.1754944e-38, %v367_v25 }
 0x12b   :  { %v394_v29 = vmul.f32 %v393_v14, %v1468_v27  ;;  %v466_v42 = vmul.f32 3.8918573e-05, %v1607_v7  ;;  %v714_v34 = vmul.f32 %v713_v21, %v1500_v17  ;;  %v749_v40 = vadd.f32 0.014752088, %v748_v52 }
 0x12c   :  { %v364_v12 = vsel %vm363_vm3, %v1100_v10, %v360_v22  ;;  %v432_v58 = vmul.f32 %v431_v63, %v1509_v38  ;;  %v459_v36 = vmul.f32 %v1677_v31, %v1607_v7  ;;  %v824_v16 = vadd.f32 1.0, %v1044_v19 }
 0x12d   :  { %v369_v59 = vsel %vm1821_vm2, %v368_v5, %v364_v12  ;;  %v1834_v20 = vadd.f32 1.0, %v394_v29  ;;  %v777_v27 = vmul.f32 %v1743_v53, %v1670_v39  ;;  %v1839_v60 = vadd.f32 1.0, %v714_v34 }
 0x12e   :  { %v1102_v45 = vpop.eup %1101  ;;  %v370_v47 = vmul.f32 %v369_v59, %v1625_v37  ;;  %v433_v17 = vadd.f32 0.4994258, %v432_v58  ;;  %v840_v10 = vmul.f32 %v824_v16, %v1484_v46  ;;  %v750_v31 = vmul.f32 %v749_v40, %v1547_v43 }
 0x12f   :  { %v677_v49 = vmul.f32 %v1102_v45, %v1810_v9  ;;  %1103 = vrcp.f32 %v1834_v20  ;;  %v1847_v54 = vmul.f32 %v1652_v44, %v2024_v61  ;;  %v685_v53 = vand.u32 2147483647, %v1810_v9 }
 0x130   :  { %v1037_v18 = vclamps-f32 %v370_v47, 1.0  ;;  %v467_v48 = vadd.f32 0.001143296, %v466_v42  ;;  %v1852_v37 = vmul.f32 %v1668_v13, %v1547_v43  ;;  %926 = vmatmul.f32.gmra.mxu3 %v840_v10  ;;  %v687_v25 = vand.u32 2147483648, %v1810_v9  ;;  %v2025_v13 = vld [vmem:[#allocation7_spill] sm:$0xff] }
 0x131   :  { %v678_v46 = vsub.f32 1.0, %v677_v49  ;;  %1105 = vrcp.f32 %v1839_v60  ;;  %v1856_v41 = vadd.f32 0.05243302, %v459_v36  ;;  %v1858_v4 = vadd.f32 0.0036580483, %v777_v27  ;;  %v2031_v36 = vld [vmem:[#allocation3_spill] sm:$0xff] }
 0x132   :  { %v817_v44 = vadd.f32 1.0, %v1037_v18  ;;  %vm681_vm4 = vweird.f32 %v1810_v9  ;;  %vm682_vm5 = vweird.f32 %v1102_v45  ;;  %v434_v6 = vmul.f32 %v433_v17, %v1509_v38 }
 0x133   :  { %v679_v28 = vmul.f32 %v1102_v45, %v678_v46  ;;  %v751_v50 = vadd.f32 0.112945676, %v750_v31  ;;  %vm1863_vm6 = vcmp.eq.f32.partialorder %v685_v53, 8.507059e+37  ;;  %v468_v24 = vmul.f32 %v467_v48, %v1607_v7  ;;  %vm683_vm7 = vmor %vm681_vm4, %vm682_vm5 }
 0x134   :  { %v833_v1 = vmul.f32 %v817_v44, %v2025_v13  ;;  %v786_v23 = vmul.f32 3.8918573e-05, %v1670_v39  ;;  %v688_v56 = vor.u32 1.1754944e-38, %v687_v25  ;;  %v1869_v2 = vadd.f32 1.0, %v434_v6 }
 0x135   :  { %v1104_v57 = vpop.eup %1103  ;;  %v680_v35 = vadd.f32 %v1102_v45, %v679_v28  ;;  %v752_v30 = vmul.f32 %v751_v50, %v1547_v43  ;;  %vm401_vm8 = vweird.f32 %v1834_v20  ;;  %v469_v11 = vadd.f32 0.014752088, %v468_v24 }
 0x136   :  { %905 = vmatmul.f32.gmra.mxu1 %v833_v1  ;;  %v397_v38 = vmul.f32 %v1104_v57, %v1834_v20  ;;  %v787_v3 = vadd.f32 0.001143296, %v786_v23  ;;  %v405_v22 = vand.u32 2147483647, %v1834_v20  ;;  %v407_v21 = vand.u32 2147483648, %v1834_v20 }
 0x137   :  { %v1106_v33 = vpop.eup %1105  ;;  %v684_v14 = vsel %vm683_vm7, %v1102_v45, %v680_v35  ;;  %1107 = vrcp.f32 %v1869_v2  ;;  %vm721_vm9 = vweird.f32 %v1839_v60  ;;  %vm402_vm10 = vweird.f32 %v1104_v57 }
 0x138   :  { %v689_v63 = vsel %vm1863_vm6, %v688_v56, %v684_v14  ;;  %v398_v52 = vsub.f32 1.0, %v397_v38  ;;  %v717_v9 = vmul.f32 %v1106_v33, %v1839_v60  ;;  %v725_v5 = vand.u32 2147483647, %v1839_v60  ;;  %vm403_vm13 = vmor %vm401_vm8, %vm402_vm10 }
 0x139   :  { %v690_v19 = vmul.f32 %v689_v63, %v1629_v62  ;;  %v753_v29 = vadd.f32 0.4994258, %v752_v30  ;;  %v470_v34 = vmul.f32 %v469_v11, %v1607_v7  ;;  %v788_v58 = vmul.f32 %v787_v3, %v1670_v39 }
 0x13a   :  { %v399_v42 = vmul.f32 %v1104_v57, %v398_v52  ;;  %v718_v12 = vsub.f32 1.0, %v717_v9  ;;  %vm1887_vm11 = vcmp.eq.f32.partialorder %v405_v22, 8.507059e+37  ;;  %v727_v16 = vand.u32 2147483648, %v1839_v60 }
 0x13b   :  { %v1045_v40 = vclamps-f32 %v690_v19, 1.0  ;;  %v754_v59 = vmul.f32 %v753_v29, %v1547_v43  ;;  %v408_v45 = vor.u32 1.1754944e-38, %v407_v21  ;;  %vm722_vm12 = vweird.f32 %v1106_v33  ;;  %v2030_v43 = vld [vmem:[#allocation8_spill] sm:$0xff] }
 0x13c   :  { %v400_v62 = vadd.f32 %v1104_v57, %v399_v42  ;;  %v719_v27 = vmul.f32 %v1106_v33, %v718_v12  ;;  %v471_v49 = vadd.f32 0.112945676, %v470_v34  ;;  %v789_v31 = vadd.f32 0.014752088, %v788_v58  ;;  %vm723_vm15 = vmor %vm721_vm9, %vm722_vm12 }
 0x13d   :  { %v1108_v47 = vpop.eup %1107  ;;  %v825_v17 = vadd.f32 1.0, %v1045_v40  ;;  %v1896_v10 = vadd.f32 1.0, %v754_v59  ;;  %vm726_vm14 = vcmp.eq.f32.partialorder %v725_v5, 8.507059e+37  ;;  %v728_v25 = vor.u32 1.1754944e-38, %v727_v16 }
 0x13e   :  { %v404_v61 = vsel %vm403_vm13, %v1104_v57, %v400_v62  ;;  %v720_v18 = vadd.f32 %v1106_v33, %v719_v27  ;;  %v437_v53 = vmul.f32 %v1108_v47, %v1869_v2  ;;  %v445_v6 = vand.u32 2147483647, %v1869_v2 }
 0x13f   :  { %v841_v48 = vmul.f32 %v825_v17, %v2030_v43  ;;  %v409_v46 = vsel %vm1887_vm11, %v408_v45, %v404_v61  ;;  %1109 = vrcp.f32 %v1896_v10  ;;  %v447_v13 = vand.u32 2147483648, %v1869_v2  ;;  %v2032_v45 = vld [vmem:[#allocation6_spill] sm:$0xff] }
 0x140   :  { %v410_v20 = vmul.f32 %v409_v46, %v1642_v26  ;;  %v724_v44 = vsel %vm723_vm15, %v1106_v33, %v720_v18  ;;  %v438_v28 = vsub.f32 1.0, %v437_v53  ;;  %v472_v1 = vmul.f32 %v471_v49, %v1607_v7 }
 0x141   :  { %929 = vmatmul.f32.gmra.mxu3 %v841_v48  ;;  %v729_v50 = vsel %vm726_vm14, %v728_v25, %v724_v44  ;;  %v790_v0 = vmul.f32 %v789_v31, %v1670_v39  ;;  %vm442_vm0 = vweird.f32 %v1108_v47  ;;  %v461_v26 = vmul.f32 %v1856_v41, %v1607_v7 }
 0x142   :  { %v1038_v24 = vclamps-f32 %v410_v20, 1.0  ;;  %v730_v60 = vmul.f32 %v729_v50, %v1645_v15  ;;  %v439_v23 = vmul.f32 %v1108_v47, %v438_v28  ;;  %v779_v57 = vmul.f32 %v1858_v4, %v1670_v39 }
 0x143   :  { %v473_v35 = vadd.f32 0.4994258, %v472_v1  ;;  %v791_v56 = vadd.f32 0.112945676, %v790_v0  ;;  %vm441_vm1 = vweird.f32 %v1869_v2  ;;  %vm446_vm3 = vcmp.eq.f32.partialorder %v445_v6, 8.507059e+37 }
 0x144   :  { %v818_v30 = vadd.f32 1.0, %v1038_v24  ;;  %v1046_v38 = vclamps-f32 %v730_v60, 1.0  ;;  %v440_v11 = vadd.f32 %v1108_v47, %v439_v23  ;;  %vm443_vm2 = vmor %vm441_vm1, %vm442_vm0  ;;  %v448_v33 = vor.u32 1.1754944e-38, %v447_v13 }
 0x145   :  { %v1110_v3 = vpop.eup %1109  ;;  %v474_v15 = vmul.f32 %v473_v35, %v1607_v7  ;;  %v792_v14 = vmul.f32 %v791_v56, %v1670_v39  ;;  %v780_v63 = vadd.f32 0.05243302, %v779_v57  ;;  %v744_v42 = vadd.f32 1.1283791, %v1852_v37 }
 0x146   :  { %v834_v41 = vmul.f32 %v818_v30, %v1560_v51  ;;  %v826_v22 = vadd.f32 1.0, %v1046_v38  ;;  %v444_v21 = vsel %vm443_vm2, %v1108_v47, %v440_v11  ;;  %v757_v4 = vmul.f32 %v1110_v3, %v1896_v10 }
 0x147   :  { %v449_v52 = vsel %vm446_vm3, %v448_v33, %v444_v21  ;;  %v475_v9 = vadd.f32 1.0, %v474_v15  ;;  %v793_v19 = vadd.f32 0.4994258, %v792_v14  ;;  %v765_v12 = vand.u32 2147483647, %v1896_v10 }
 0x148   :  { %908 = vmatmul.f32.gmra.mxu1 %v834_v41  ;;  %v842_v2 = vmul.f32 %v826_v22, %v1572_v32  ;;  %v450_v5 = vmul.f32 %v449_v52, %v1847_v54  ;;  %v758_v29 = vsub.f32 1.0, %v757_v4  ;;  %v767_v51 = vand.u32 2147483648, %v1896_v10  ;;  %v2034_v22 = vld [vmem:[#allocation9_spill] sm:$0xff] }
 0x149   :  { %1111 = vrcp.f32 %v475_v9  ;;  %vm762_vm4 = vweird.f32 %v1110_v3  ;;  %v794_v40 = vmul.f32 %v793_v19, %v1670_v39  ;;  %v147_v16 = vmul.f32 0.5, %v2031_v36 }
 0x14a   :  { %932 = vmatmul.f32.gmra.mxu3 %v842_v2  ;;  %v1039_v34 = vclamps-f32 %v450_v5, 1.0  ;;  %v759_v58 = vmul.f32 %v1110_v3, %v758_v29  ;;  %v462_v59 = vadd.f32 0.18741608, %v461_v26  ;;  %v781_v32 = vmul.f32 %v780_v63, %v1670_v39  ;;  %v1082_v2 = vld [vmem:[%s1992_s4] ss:$0 sm:$0xff]  ;;  %v2035_v5 = vld [vmem:[#allocation10_spill] sm:$0xff] }
 0x14b   :  { %vm761_vm5 = vweird.f32 %v1896_v10  ;;  %v795_v37 = vadd.f32 1.0, %v794_v40  ;;  %v745_v27 = vmul.f32 %v744_v42, %v2032_v45  ;;  %v768_v47 = vor.u32 1.1754944e-38, %v767_v51  ;;  %v2033_v10 = vld [vmem:[#allocation5_spill] sm:$0xff] }
 0x14c   :  { %v819_v54 = vadd.f32 1.0, %v1039_v34  ;;  %v760_v62 = vadd.f32 %v1110_v3, %v759_v58  ;;  %vm763_vm6 = vmor %vm761_vm5, %vm762_vm4  ;;  %vm766_vm7 = vcmp.eq.f32.partialorder %v765_v12, 8.507059e+37  ;;  %v463_v61 = vmul.f32 %v462_v59, %v1607_v7 }
 0x14d   :  { %1113 = vrcp.f32 %v795_v37  ;;  %v782_v18 = vadd.f32 0.18741608, %v781_v32  ;;  %v155_v20 = vmul.f32 0.5, %v2033_v10  ;;  %v487_v6 = vand.u32 2147483648, %v475_v9 }
 0x14e   :  { %v835_v17 = vmul.f32 %v819_v54, %v147_v16  ;;  %v764_v49 = vsel %vm763_vm6, %v1110_v3, %v760_v62  ;;  %v464_v44 = vadd.f32 1.1283791, %v463_v61  ;;  %v485_v0 = vand.u32 2147483647, %v475_v9 }
 0x14f   :  { %v1112_v31 = vpop.eup %1111  ;;  %v769_v53 = vsel %vm766_vm7, %v768_v47, %v764_v49  ;;  %v783_v28 = vmul.f32 %v782_v18, %v1670_v39  ;;  %vm481_vm9 = vweird.f32 %v475_v9  ;;  %v488_v26 = vor.u32 1.1754944e-38, %v487_v6 }
 0x150   :  { %911 = vmatmul.f32.gmra.mxu1 %v835_v17  ;;  %v770_v43 = vmul.f32 %v769_v53, %v745_v27  ;;  %v477_v48 = vmul.f32 %v1112_v31, %v475_v9  ;;  %vm482_vm8 = vweird.f32 %v1112_v31  ;;  %v465_v23 = vmul.f32 %v464_v44, %v1579_v55 }
 0x151   :  { %vm483_vm10 = vmor %vm481_vm9, %vm482_vm8  ;;  %v784_v35 = vadd.f32 1.1283791, %v783_v28  ;;  %vm486_vm11 = vcmp.eq.f32.partialorder %v485_v0, 8.507059e+37  ;;  %v807_v39 = vand.u32 2147483648, %v795_v37  ;;  %v805_v11 = vand.u32 2147483647, %v795_v37 }
 0x152   :  { %v1047_v46 = vclamps-f32 %v770_v43, 1.0  ;;  %v478_v25 = vsub.f32 1.0, %v477_v48  ;;  %vm801_vm13 = vweird.f32 %v795_v37  ;;  %v148_v21 = vmul.f32 0.5, %v2034_v22 }
 0x153   :  { %v1114_v50 = vpop.eup %1113  ;;  %v808_v14 = vor.u32 1.1754944e-38, %v807_v39  ;;  %v785_v55 = vmul.f32 %v784_v35, %v1636_v8  ;;  %vm806_vm15 = vcmp.eq.f32.partialorder %v805_v11, 8.507059e+37  ;;  %v156_v29 = vmul.f32 0.5, %v2035_v5 }
 0x154   :  { %v827_v13 = vadd.f32 1.0, %v1047_v46  ;;  %v479_v1 = vmul.f32 %v1112_v31, %v478_v25  ;;  %v797_v24 = vmul.f32 %v1114_v50, %v795_v37  ;;  %vm802_vm12 = vweird.f32 %v1114_v50 }
 0x155   :  { %vm803_vm14 = vmor %vm801_vm13, %vm802_vm12 }
 0x156   :  { %v843_v7 = vmul.f32 %v827_v13, %v155_v20  ;;  %v480_v60 = vadd.f32 %v1112_v31, %v479_v1  ;;  %v798_v57 = vsub.f32 1.0, %v797_v24 }
 0x158   :  { %935 = vmatmul.f32.gmra.mxu3 %v843_v7  ;;  %v484_v56 = vsel %vm483_vm10, %v1112_v31, %v480_v60  ;;  %v799_v38 = vmul.f32 %v1114_v50, %v798_v57 }
 0x159   :  { %v489_v30 = vsel %vm486_vm11, %v488_v26, %v484_v56 }
 0x15a   :  { %v490_v3 = vmul.f32 %v489_v30, %v465_v23  ;;  %v800_v33 = vadd.f32 %v1114_v50, %v799_v38 }
 0x15c   :  { %v1040_v15 = vclamps-f32 %v490_v3, 1.0  ;;  %v804_v41 = vsel %vm803_vm14, %v1114_v50, %v800_v33 }
 0x15d   :  { %v809_v63 = vsel %vm806_vm15, %v808_v14, %v804_v41 }
 0x15e   :  { %v820_v4 = vadd.f32 1.0, %v1040_v15  ;;  %v810_v52 = vmul.f32 %v809_v63, %v785_v55 }
 0x160   :  { %v836_v9 = vmul.f32 %v820_v4, %v148_v21  ;;  %v1048_v19 = vclamps-f32 %v810_v52, 1.0 }
 0x162   :  { %914 = vmatmul.f32.gmra.mxu1 %v836_v9  ;;  %v828_v42 = vadd.f32 1.0, %v1048_v19 }
 0x164   :  { %v894_v12 = vpop.f32.mrf.mxu1  ;;  %v844_v51 = vmul.f32 %v828_v42, %v156_v29 }
 0x165   :  { %v997_v8 = vadd.f32 %v1082_v2, %v894_v12 }
 0x166   :  { %938 = vmatmul.f32.gmra.mxu3 %v844_v51 }
 0x167   :  { %1013 = vst [vmem:[%s1993_s5] sm:$0xff] %v997_v8 }
 0x18a   :  { %v918_v34 = vpop.f32.mrf.mxu3 }
 0x18b   :  { %v1005_v58 = vadd.f32 %v1082_v2, %v918_v34 }
 0x18d   :  { %1021 = vst [vmem:[%s1993_s5 + $0x40] sm:$0xff] %v1005_v58 }
 0x18e   :  { %v897_v40 = vpop.f32.mrf.mxu1 }
 0x18f   :  { %v998_v36 = vadd.f32 %v1082_v2, %v897_v40 }
 0x191   :  { %1014 = vst [vmem:[%s1993_s5 + $0x8] sm:$0xff] %v998_v36 }
 0x196   :  { %v900_v16 = vpop.f32.mrf.mxu1 }
 0x197   :  { %v999_v59 = vadd.f32 %v1082_v2, %v900_v16 }
 0x199   :  { %1015 = vst [vmem:[%s1993_s5 + $0x10] sm:$0xff] %v999_v59  ;;  %v921_v32 = vpop.f32.mrf.mxu3 }
 0x19a   :  { %v1006_v54 = vadd.f32 %v1082_v2, %v921_v32 }
 0x19c   :  { %1022 = vst [vmem:[%s1993_s5 + $0x48] sm:$0xff] %v1006_v54 }
 0x1a4   :  { %v924_v62 = vpop.f32.mrf.mxu3 }
 0x1a5   :  { %v1007_v37 = vadd.f32 %v1082_v2, %v924_v62  ;;  %v903_v45 = vpop.f32.mrf.mxu1 }
 0x1a6   :  { %v1000_v27 = vadd.f32 %v1082_v2, %v903_v45 }
 0x1a7   :  { %1023 = vst [vmem:[%s1993_s5 + $0x50] sm:$0xff] %v1007_v37 }
 0x1a8   :  { %1016 = vst [vmem:[%s1993_s5 + $0x18] sm:$0xff] %v1000_v27 }
 0x1b3   :  { %v906_v47 = vpop.f32.mrf.mxu1  ;;  %v927_v49 = vpop.f32.mrf.mxu3 }
 0x1b4   :  { %v1001_v17 = vadd.f32 %v1082_v2, %v906_v47  ;;  %v1008_v31 = vadd.f32 %v1082_v2, %v927_v49 }
 0x1b6   :  { %1017 = vst [vmem:[%s1993_s5 + $0x20] sm:$0xff] %v1001_v17 }
 0x1b7   :  { %1024 = vst [vmem:[%s1993_s5 + $0x58] sm:$0xff] %v1008_v31 }
 0x1c4   :  { %v930_v61 = vpop.f32.mrf.mxu3 }
 0x1c5   :  { %v909_v18 = vpop.f32.mrf.mxu1  ;;  %v1009_v53 = vadd.f32 %v1082_v2, %v930_v61 }
 0x1c6   :  { %v1002_v43 = vadd.f32 %v1082_v2, %v909_v18 }
 0x1c7   :  { %1025 = vst [vmem:[%s1993_s5 + $0x60] sm:$0xff] %v1009_v53 }
 0x1c8   :  { %1018 = vst [vmem:[%s1993_s5 + $0x28] sm:$0xff] %v1002_v43 }
 0x1cd   :  { %v912_v48 = vpop.f32.mrf.mxu1  ;;  %v933_v46 = vpop.f32.mrf.mxu3 }
 0x1ce   :  { %v1003_v25 = vadd.f32 %v1082_v2, %v912_v48  ;;  %v1010_v10 = vadd.f32 %v1082_v2, %v933_v46 }
 0x1d0   :  { %1019 = vst [vmem:[%s1993_s5 + $0x30] sm:$0xff] %v1003_v25 }
 0x1d1   :  { %1026 = vst [vmem:[%s1993_s5 + $0x68] sm:$0xff] %v1010_v10 }
 0x1db   :  { %v936_v20 = vpop.f32.mrf.mxu3 }
 0x1dc   :  { %v1011_v44 = vadd.f32 %v1082_v2, %v936_v20 }
 0x1de   :  { %1027 = vst [vmem:[%s1993_s5 + $0x70] sm:$0xff] %v1011_v44 }
 0x1df   :  { %v915_v28 = vpop.f32.mrf.mxu1 }
 0x1e0   :  { %v1004_v6 = vadd.f32 %v1082_v2, %v915_v28 }
 0x1e2   :  { %1020 = vst [vmem:[%s1993_s5 + $0x38] sm:$0xff] %v1004_v6 }
 0x1e9   :  { %v939_v50 = vpop.f32.mrf.mxu3 }
 0x1ea   :  { %v1012_v13 = vadd.f32 %v1082_v2, %v939_v50 }
 0x1ec   :  { %1028 = vst [vmem:[%s1993_s5 + $0x78] sm:$0xff] %v1012_v13 }

</bundles_post_ra>
